<compile_context>
chip_gen: v7x
topology: tpu7x:2x2x1
jax: 0.10.0
libtpu: 0.0.40
codegen_flags: <defaults>
</compile_context>

<pallas_src>
import functools

import jax
import jax.numpy as jnp
from jax.experimental import pallas as pl
from jax.experimental.pallas import tpu as pltpu


# ----------------------------- helpers ----------------------------------------


def _round_up(x, m):
    return ((x + m - 1) // m) * m


def _pad2d(a, rows, cols):
    r, c = a.shape
    return jnp.pad(a, ((0, rows - r), (0, cols - c)))


def _silu(x):
    return x * jax.nn.sigmoid(x)


# ----------------------------- fused kernel ------------------------------------


def vae_fused_kernel(x_ref, eps_ref,
                     ew1, eb1, ew2, eb2, ew3, eb3,
                     ew4m, eb4m, ew4v, eb4v,
                     dw1, db1, dw2, db2, dw3, db3, dw4, db4,
                     recon_ref, z_ref, mean_ref, logvar_ref):
    """Encoder -> reparameterize -> decoder, fully fused for one batch tile."""
    x = x_ref[...]

    # ---- encoder: Linear->ReLU, Linear->Sigmoid, Linear->SiLU, Linear ----
    h = jnp.maximum(
        jnp.dot(x, ew1[...], preferred_element_type=jnp.float32) + eb1[...], 0.0)
    h = jax.nn.sigmoid(
        jnp.dot(h, ew2[...], preferred_element_type=jnp.float32) + eb2[...])
    h = _silu(
        jnp.dot(h, ew3[...], preferred_element_type=jnp.float32) + eb3[...])
    # w4 was pre-split in the wrapper -> lane-dense mean/logvar (no chunk slice).
    mean = jnp.dot(h, ew4m[...], preferred_element_type=jnp.float32) + eb4m[...]
    logvar = jnp.dot(h, ew4v[...], preferred_element_type=jnp.float32) + eb4v[...]
    mean_ref[...] = mean
    logvar_ref[...] = logvar

    # ---- reparameterize: z = mean + eps * exp(0.5 * logvar) ----
    z = mean + eps_ref[...] * jnp.exp(0.5 * logvar)
    z_ref[...] = z

    # ---- decoder: Linear->ReLU, Linear->Sigmoid, Linear->SiLU, Linear->Sigmoid ----
    d = jnp.maximum(
        jnp.dot(z, dw1[...], preferred_element_type=jnp.float32) + db1[...], 0.0)
    d = jax.nn.sigmoid(
        jnp.dot(d, dw2[...], preferred_element_type=jnp.float32) + db2[...])
    d = _silu(
        jnp.dot(d, dw3[...], preferred_element_type=jnp.float32) + db3[...])
    recon_ref[...] = jax.nn.sigmoid(
        jnp.dot(d, dw4[...], preferred_element_type=jnp.float32) + db4[...])


# ----------------------------- wrapper ------------------------------------------


def vae_forward(x, eps, params, *, input_dim, hidden_dim, latent_dim,
                block_b=256):
    """Forward pass: returns (recon, z, mean, logvar) like the PyTorch module."""
    B = x.shape[0]
    (ew1, eb1, ew2, eb2, ew3, eb3, ew4, eb4,
     dw1, db1, dw2, db2, dw3, db3, dw4, db4) = params

    LANE = 128
    SUBLANE = 8
    d_in = _round_up(input_dim, LANE)
    d_h = _round_up(hidden_dim, LANE)
    d_h2 = _round_up(2 * hidden_dim, LANE)
    d_l = _round_up(latent_dim, LANE)

    # Batch tiling: tile is a multiple of 8 sublanes; grid over batch tiles.
    tb = min(block_b, _round_up(B, SUBLANE))
    b_pad = _round_up(B, tb)
    grid = (pl.cdiv(b_pad, tb),)

    # Pre-split the last encoder layer into mean / logvar halves (lane-dense
    # output stores, no cross-lane slicing inside the kernel).
    ew4m, ew4v = ew4[:, :latent_dim], ew4[:, latent_dim:]
    eb4m, eb4v = eb4[:, :latent_dim], eb4[:, latent_dim:]

    # Zero-pad activations / weights to lane/sublane multiples. Padded weight
    # rows & cols are zero and padded eps is zero, so padded lanes stay inert.
    xp = _pad2d(x, b_pad, d_in)
    epsp = _pad2d(eps, b_pad, d_l)

    weights = [
        _pad2d(ew1, d_in, d_h), _pad2d(eb1, 1, d_h),
        _pad2d(ew2, d_h, d_h2), _pad2d(eb2, 1, d_h2),
        _pad2d(ew3, d_h2, d_h), _pad2d(eb3, 1, d_h),
        _pad2d(ew4m, d_h, d_l), _pad2d(eb4m, 1, d_l),
        _pad2d(ew4v, d_h, d_l), _pad2d(eb4v, 1, d_l),
        _pad2d(dw1, d_l, d_h), _pad2d(db1, 1, d_h),
        _pad2d(dw2, d_h, d_h2), _pad2d(db2, 1, d_h2),
        _pad2d(dw3, d_h2, d_h), _pad2d(db3, 1, d_h),
        _pad2d(dw4, d_h, d_in), _pad2d(db4, 1, d_in),
    ]

    def batch_spec(n):
        return pl.BlockSpec((tb, n), lambda i: (i, 0))

    def const_spec(shape):
        # Constant block index -> weight stays resident in VMEM across the grid.
        return pl.BlockSpec(shape, lambda i: (0, 0))

    in_specs = ([batch_spec(d_in), batch_spec(d_l)]
                + [const_spec(tuple(w.shape)) for w in weights])
    out_specs = (batch_spec(d_in), batch_spec(d_l),
                 batch_spec(d_l), batch_spec(d_l))
    out_shape = (jax.ShapeDtypeStruct((b_pad, d_in), jnp.float32),
                 jax.ShapeDtypeStruct((b_pad, d_l), jnp.float32),
                 jax.ShapeDtypeStruct((b_pad, d_l), jnp.float32),
                 jax.ShapeDtypeStruct((b_pad, d_l), jnp.float32))

    # VMEM budget: weights (single-buffered, constant index) + batch tiles
    # (double-buffered by the pipeline) + activation headroom.
    weight_bytes = 4 * sum(int(w.size) for w in weights)
    tile_bytes = 4 * tb * (d_in + d_l + d_in + 3 * d_l)      # in + out tiles
    act_bytes = 4 * tb * (d_h2 + d_h + d_in + d_l)           # largest live temps
    vmem_budget = weight_bytes + 2 * tile_bytes + 2 * act_bytes + (8 << 20)
    vmem_budget = min(max(vmem_budget, 32 << 20), 100 << 20)

    # Advisory cost estimate (8 matmuls + elementwise/transcendental tail).
    flops = 2 * b_pad * (d_in * d_h + d_h * d_h2 + d_h2 * d_h + 2 * d_h * d_l
                         + d_l * d_h + d_h * d_h2 + d_h2 * d_h + d_h * d_in)
    transcendentals = b_pad * (d_h2 + d_h + d_l + d_h2 + d_h + d_in)
    bytes_accessed = 4 * (xp.size + epsp.size + sum(w.size for w in weights)
                          + b_pad * (d_in + 3 * d_l))

    recon_p, z_p, mean_p, logvar_p = pl.pallas_call(
        vae_fused_kernel,
        grid=grid,
        in_specs=in_specs,
        out_specs=out_specs,
        out_shape=out_shape,
        compiler_params=pltpu.CompilerParams(
            dimension_semantics=("parallel",),
            vmem_limit_bytes=int(vmem_budget)),
        cost_estimate=pl.CostEstimate(flops=int(flops),
                                      transcendentals=int(transcendentals),
                                      bytes_accessed=int(bytes_accessed)),
    )(xp, epsp, *weights)

    return (recon_p[:B, :input_dim],
            z_p[:B, :latent_dim],
            mean_p[:B, :latent_dim],
            logvar_p[:B, :latent_dim])


# ----------------------------- param init --------------------------------------


def init_linear(key, in_dim, out_dim):
    """Deterministic init mimicking torch.nn.Linear defaults.

    Returns weight already transposed to [in_dim, out_dim] and bias as [1, out_dim].
    """
    kw, kb = jax.random.split(key)
    bound = 1.0 / jnp.sqrt(in_dim)
    w = jax.random.uniform(kw, (in_dim, out_dim), jnp.float32, -bound, bound)
    b = jax.random.uniform(kb, (1, out_dim), jnp.float32, -bound, bound)
    return w, b


def init_vae_params(key, input_dim, hidden_dim, latent_dim):
    keys = jax.random.split(key, 8)
    # encoder: input -> hidden -> 2*hidden -> hidden -> 2*latent
    ew1, eb1 = init_linear(keys[0], input_dim, hidden_dim)
    ew2, eb2 = init_linear(keys[1], hidden_dim, 2 * hidden_dim)
    ew3, eb3 = init_linear(keys[2], 2 * hidden_dim, hidden_dim)
    ew4, eb4 = init_linear(keys[3], hidden_dim, 2 * latent_dim)
    # decoder: latent -> hidden -> 2*hidden -> hidden -> input
    dw1, db1 = init_linear(keys[4], latent_dim, hidden_dim)
    dw2, db2 = init_linear(keys[5], hidden_dim, 2 * hidden_dim)
    dw3, db3 = init_linear(keys[6], 2 * hidden_dim, hidden_dim)
    dw4, db4 = init_linear(keys[7], hidden_dim, input_dim)
    return (ew1, eb1, ew2, eb2, ew3, eb3, ew4, eb4,
            dw1, db1, dw2, db2, dw3, db3, dw4, db4)


# ----------------------------- reference (pure JAX) -----------------------------


def vae_forward_ref(x, eps, params):
    (ew1, eb1, ew2, eb2, ew3, eb3, ew4, eb4,
     dw1, db1, dw2, db2, dw3, db3, dw4, db4) = params
    h = jnp.maximum(x @ ew1 + eb1, 0.0)
    h = jax.nn.sigmoid(h @ ew2 + eb2)
    h = _silu(h @ ew3 + eb3)
    h = h @ ew4 + eb4
    mean, logvar = jnp.split(h, 2, axis=-1)
    z = mean + eps * jnp.exp(0.5 * logvar)
    d = jnp.maximum(z @ dw1 + db1, 0.0)
    d = jax.nn.sigmoid(d @ dw2 + db2)
    d = _silu(d @ dw3 + db3)
    recon = jax.nn.sigmoid(d @ dw4 + db4)
    return recon, z, mean, logvar


# ----------------------------- main ---------------------------------------------


if __name__ == "__main__":
    input_dim, hidden_dim, latent_dim = 16, 32, 8
    batch = 8

    key = jax.random.PRNGKey(0)
    k_params, k_x, k_eps = jax.random.split(key, 3)

    params = init_vae_params(k_params, input_dim, hidden_dim, latent_dim)
    x = jax.random.normal(k_x, (batch, input_dim), jnp.float32)
    # eps is the reparameterization noise (torch.randn_like(std)); generated
    # deterministically here and passed into the kernel.
    eps = jax.random.normal(k_eps, (batch, latent_dim), jnp.float32)

    fwd = jax.jit(functools.partial(vae_forward, input_dim=input_dim,
                                    hidden_dim=hidden_dim,
                                    latent_dim=latent_dim))
    recon, z, mean, logvar = fwd(x, eps, params)
    jax.block_until_ready((recon, z, mean, logvar))

    recon_r, z_r, mean_r, logvar_r = vae_forward_ref(x, eps, params)
    assert recon.shape == (batch, input_dim)
    assert z.shape == (batch, latent_dim)
    assert mean.shape == (batch, latent_dim)
    assert logvar.shape == (batch, latent_dim)
    assert jnp.allclose(mean, mean_r, atol=1e-5, rtol=1e-5)
    assert jnp.allclose(logvar, logvar_r, atol=1e-5, rtol=1e-5)
    assert jnp.allclose(z, z_r, atol=1e-5, rtol=1e-5)
    assert jnp.allclose(recon, recon_r, atol=1e-5, rtol=1e-5)

    print("KERNEL_OK")
</pallas_src>

<mosaic_0001>
module attributes {stable_mosaic.version = 11 : i64} {
  func.func @vae_fused_kernel(%arg0: i32, %arg1: memref<8x128xf32, #tpu.memory_space<vmem>>, %arg2: memref<8x128xf32, #tpu.memory_space<vmem>>, %arg3: memref<128x128xf32, #tpu.memory_space<vmem>>, %arg4: memref<1x128xf32, #tpu.memory_space<vmem>>, %arg5: memref<128x128xf32, #tpu.memory_space<vmem>>, %arg6: memref<1x128xf32, #tpu.memory_space<vmem>>, %arg7: memref<128x128xf32, #tpu.memory_space<vmem>>, %arg8: memref<1x128xf32, #tpu.memory_space<vmem>>, %arg9: memref<128x128xf32, #tpu.memory_space<vmem>>, %arg10: memref<1x128xf32, #tpu.memory_space<vmem>>, %arg11: memref<128x128xf32, #tpu.memory_space<vmem>>, %arg12: memref<1x128xf32, #tpu.memory_space<vmem>>, %arg13: memref<128x128xf32, #tpu.memory_space<vmem>>, %arg14: memref<1x128xf32, #tpu.memory_space<vmem>>, %arg15: memref<128x128xf32, #tpu.memory_space<vmem>>, %arg16: memref<1x128xf32, #tpu.memory_space<vmem>>, %arg17: memref<128x128xf32, #tpu.memory_space<vmem>>, %arg18: memref<1x128xf32, #tpu.memory_space<vmem>>, %arg19: memref<128x128xf32, #tpu.memory_space<vmem>>, %arg20: memref<1x128xf32, #tpu.memory_space<vmem>>, %arg21: memref<8x128xf32, #tpu.memory_space<vmem>>, %arg22: memref<8x128xf32, #tpu.memory_space<vmem>>, %arg23: memref<8x128xf32, #tpu.memory_space<vmem>>, %arg24: memref<8x128xf32, #tpu.memory_space<vmem>>) attributes {dimension_semantics = [#tpu.dimension_semantics<parallel>], iteration_bounds = array<i64: 1>, scalar_prefetch = 0 : i64, scratch_operands = 0 : i64, tpu.core_type = #tpu.core_type<tc>, window_params = [{transform_indices = @transform_0, window_bounds = array<i64: 8, 128>}, {transform_indices = @transform_1, window_bounds = array<i64: 8, 128>}, {pipeline_mode = #tpu.pipeline_mode<synchronous>, transform_indices = @transform_2, window_bounds = array<i64: 128, 128>}, {pipeline_mode = #tpu.pipeline_mode<synchronous>, transform_indices = @transform_3, window_bounds = array<i64: 1, 128>}, {pipeline_mode = #tpu.pipeline_mode<synchronous>, transform_indices = @transform_4, window_bounds = array<i64: 128, 128>}, {pipeline_mode = #tpu.pipeline_mode<synchronous>, transform_indices = @transform_5, window_bounds = array<i64: 1, 128>}, {pipeline_mode = #tpu.pipeline_mode<synchronous>, transform_indices = @transform_6, window_bounds = array<i64: 128, 128>}, {pipeline_mode = #tpu.pipeline_mode<synchronous>, transform_indices = @transform_7, window_bounds = array<i64: 1, 128>}, {pipeline_mode = #tpu.pipeline_mode<synchronous>, transform_indices = @transform_8, window_bounds = array<i64: 128, 128>}, {pipeline_mode = #tpu.pipeline_mode<synchronous>, transform_indices = @transform_9, window_bounds = array<i64: 1, 128>}, {pipeline_mode = #tpu.pipeline_mode<synchronous>, transform_indices = @transform_10, window_bounds = array<i64: 128, 128>}, {pipeline_mode = #tpu.pipeline_mode<synchronous>, transform_indices = @transform_11, window_bounds = array<i64: 1, 128>}, {pipeline_mode = #tpu.pipeline_mode<synchronous>, transform_indices = @transform_12, window_bounds = array<i64: 128, 128>}, {pipeline_mode = #tpu.pipeline_mode<synchronous>, transform_indices = @transform_13, window_bounds = array<i64: 1, 128>}, {pipeline_mode = #tpu.pipeline_mode<synchronous>, transform_indices = @transform_14, window_bounds = array<i64: 128, 128>}, {pipeline_mode = #tpu.pipeline_mode<synchronous>, transform_indices = @transform_15, window_bounds = array<i64: 1, 128>}, {pipeline_mode = #tpu.pipeline_mode<synchronous>, transform_indices = @transform_16, window_bounds = array<i64: 128, 128>}, {pipeline_mode = #tpu.pipeline_mode<synchronous>, transform_indices = @transform_17, window_bounds = array<i64: 1, 128>}, {pipeline_mode = #tpu.pipeline_mode<synchronous>, transform_indices = @transform_18, window_bounds = array<i64: 128, 128>}, {pipeline_mode = #tpu.pipeline_mode<synchronous>, transform_indices = @transform_19, window_bounds = array<i64: 1, 128>}, {transform_indices = @transform_20, window_bounds = array<i64: 8, 128>}, {transform_indices = @transform_21, window_bounds = array<i64: 8, 128>}, {transform_indices = @transform_22, window_bounds = array<i64: 8, 128>}, {transform_indices = @transform_23, window_bounds = array<i64: 8, 128>}]} {
    %c0 = arith.constant 0 : index
    %c0_0 = arith.constant 0 : index
    %0 = vector.load %arg1[%c0, %c0_0] : memref<8x128xf32, #tpu.memory_space<vmem>>, vector<8x128xf32>
    %c0_1 = arith.constant 0 : index
    %c0_2 = arith.constant 0 : index
    %1 = vector.load %arg3[%c0_1, %c0_2] : memref<128x128xf32, #tpu.memory_space<vmem>>, vector<128x128xf32>
    %cst = arith.constant dense<0.000000e+00> : vector<8x128xf32>
    %2 = tpu.matmul %0, %1, %cst {dimension_numbers = #tpu.dot_dimension_numbers<[1], [0], [0], [1], [0, 0, 1, 1], [], []>} : vector<8x128xf32>, vector<128x128xf32>, vector<8x128xf32> -> vector<8x128xf32>
    %c0_3 = arith.constant 0 : index
    %c0_4 = arith.constant 0 : index
    %3 = vector.load %arg4[%c0_3, %c0_4] : memref<1x128xf32, #tpu.memory_space<vmem>>, vector<1x128xf32>
    %4 = vector.broadcast %3 : vector<1x128xf32> to vector<8x128xf32>
    %5 = arith.addf %2, %4 : vector<8x128xf32>
    %cst_5 = arith.constant 0.000000e+00 : f32
    %6 = vector.broadcast %cst_5 : f32 to vector<8x128xf32>
    %7 = arith.maximumf %5, %6 : vector<8x128xf32>
    %c0_6 = arith.constant 0 : index
    %c0_7 = arith.constant 0 : index
    %8 = vector.load %arg5[%c0_6, %c0_7] : memref<128x128xf32, #tpu.memory_space<vmem>>, vector<128x128xf32>
    %cst_8 = arith.constant dense<0.000000e+00> : vector<8x128xf32>
    %9 = tpu.matmul %7, %8, %cst_8 {dimension_numbers = #tpu.dot_dimension_numbers<[1], [0], [0], [1], [0, 0, 1, 1], [], []>} : vector<8x128xf32>, vector<128x128xf32>, vector<8x128xf32> -> vector<8x128xf32>
    %c0_9 = arith.constant 0 : index
    %c0_10 = arith.constant 0 : index
    %10 = vector.load %arg6[%c0_9, %c0_10] : memref<1x128xf32, #tpu.memory_space<vmem>>, vector<1x128xf32>
    %11 = vector.broadcast %10 : vector<1x128xf32> to vector<8x128xf32>
    %12 = arith.addf %9, %11 : vector<8x128xf32>
    %13 = arith.negf %12 : vector<8x128xf32>
    %14 = math.exp %13 : vector<8x128xf32>
    %cst_11 = arith.constant 1.000000e+00 : f32
    %15 = vector.broadcast %cst_11 : f32 to vector<8x128xf32>
    %16 = arith.addf %15, %14 : vector<8x128xf32>
    %17 = arith.divf %15, %16 : vector<8x128xf32>
    %c0_12 = arith.constant 0 : index
    %c0_13 = arith.constant 0 : index
    %18 = vector.load %arg7[%c0_12, %c0_13] : memref<128x128xf32, #tpu.memory_space<vmem>>, vector<128x128xf32>
    %cst_14 = arith.constant dense<0.000000e+00> : vector<8x128xf32>
    %19 = tpu.matmul %17, %18, %cst_14 {dimension_numbers = #tpu.dot_dimension_numbers<[1], [0], [0], [1], [0, 0, 1, 1], [], []>} : vector<8x128xf32>, vector<128x128xf32>, vector<8x128xf32> -> vector<8x128xf32>
    %c0_15 = arith.constant 0 : index
    %c0_16 = arith.constant 0 : index
    %20 = vector.load %arg8[%c0_15, %c0_16] : memref<1x128xf32, #tpu.memory_space<vmem>>, vector<1x128xf32>
    %21 = vector.broadcast %20 : vector<1x128xf32> to vector<8x128xf32>
    %22 = arith.addf %19, %21 : vector<8x128xf32>
    %23 = arith.negf %22 : vector<8x128xf32>
    %24 = math.exp %23 : vector<8x128xf32>
    %cst_17 = arith.constant 1.000000e+00 : f32
    %25 = vector.broadcast %cst_17 : f32 to vector<8x128xf32>
    %26 = arith.addf %25, %24 : vector<8x128xf32>
    %27 = arith.divf %25, %26 : vector<8x128xf32>
    %28 = arith.mulf %22, %27 : vector<8x128xf32>
    %c0_18 = arith.constant 0 : index
    %c0_19 = arith.constant 0 : index
    %29 = vector.load %arg9[%c0_18, %c0_19] : memref<128x128xf32, #tpu.memory_space<vmem>>, vector<128x128xf32>
    %cst_20 = arith.constant dense<0.000000e+00> : vector<8x128xf32>
    %30 = tpu.matmul %28, %29, %cst_20 {dimension_numbers = #tpu.dot_dimension_numbers<[1], [0], [0], [1], [0, 0, 1, 1], [], []>} : vector<8x128xf32>, vector<128x128xf32>, vector<8x128xf32> -> vector<8x128xf32>
    %c0_21 = arith.constant 0 : index
    %c0_22 = arith.constant 0 : index
    %31 = vector.load %arg10[%c0_21, %c0_22] : memref<1x128xf32, #tpu.memory_space<vmem>>, vector<1x128xf32>
    %32 = vector.broadcast %31 : vector<1x128xf32> to vector<8x128xf32>
    %33 = arith.addf %30, %32 : vector<8x128xf32>
    %c0_23 = arith.constant 0 : index
    %c0_24 = arith.constant 0 : index
    %34 = vector.load %arg11[%c0_23, %c0_24] : memref<128x128xf32, #tpu.memory_space<vmem>>, vector<128x128xf32>
    %cst_25 = arith.constant dense<0.000000e+00> : vector<8x128xf32>
    %35 = tpu.matmul %28, %34, %cst_25 {dimension_numbers = #tpu.dot_dimension_numbers<[1], [0], [0], [1], [0, 0, 1, 1], [], []>} : vector<8x128xf32>, vector<128x128xf32>, vector<8x128xf32> -> vector<8x128xf32>
    %c0_26 = arith.constant 0 : index
    %c0_27 = arith.constant 0 : index
    %36 = vector.load %arg12[%c0_26, %c0_27] : memref<1x128xf32, #tpu.memory_space<vmem>>, vector<1x128xf32>
    %37 = vector.broadcast %36 : vector<1x128xf32> to vector<8x128xf32>
    %38 = arith.addf %35, %37 : vector<8x128xf32>
    %c0_28 = arith.constant 0 : index
    %c0_29 = arith.constant 0 : index
    %39 = vector.load %arg23[%c0_28, %c0_29] : memref<8x128xf32, #tpu.memory_space<vmem>>, vector<8x128xf32>
    tpu.vector_store %arg23[%c0_28, %c0_29], %33 {strides = array<i32>} : memref<8x128xf32, #tpu.memory_space<vmem>>, vector<8x128xf32>,
    %c0_30 = arith.constant 0 : index
    %c0_31 = arith.constant 0 : index
    %40 = vector.load %arg24[%c0_30, %c0_31] : memref<8x128xf32, #tpu.memory_space<vmem>>, vector<8x128xf32>
    tpu.vector_store %arg24[%c0_30, %c0_31], %38 {strides = array<i32>} : memref<8x128xf32, #tpu.memory_space<vmem>>, vector<8x128xf32>,
    %c0_32 = arith.constant 0 : index
    %c0_33 = arith.constant 0 : index
    %41 = vector.load %arg2[%c0_32, %c0_33] : memref<8x128xf32, #tpu.memory_space<vmem>>, vector<8x128xf32>
    %cst_34 = arith.constant 5.000000e-01 : f32
    %42 = vector.broadcast %cst_34 : f32 to vector<8x128xf32>
    %43 = arith.mulf %42, %38 : vector<8x128xf32>
    %44 = math.exp %43 : vector<8x128xf32>
    %45 = arith.mulf %41, %44 : vector<8x128xf32>
    %46 = arith.addf %33, %45 : vector<8x128xf32>
    %c0_35 = arith.constant 0 : index
    %c0_36 = arith.constant 0 : index
    %47 = vector.load %arg22[%c0_35, %c0_36] : memref<8x128xf32, #tpu.memory_space<vmem>>, vector<8x128xf32>
    tpu.vector_store %arg22[%c0_35, %c0_36], %46 {strides = array<i32>} : memref<8x128xf32, #tpu.memory_space<vmem>>, vector<8x128xf32>,
    %c0_37 = arith.constant 0 : index
    %c0_38 = arith.constant 0 : index
    %48 = vector.load %arg13[%c0_37, %c0_38] : memref<128x128xf32, #tpu.memory_space<vmem>>, vector<128x128xf32>
    %cst_39 = arith.constant dense<0.000000e+00> : vector<8x128xf32>
    %49 = tpu.matmul %46, %48, %cst_39 {dimension_numbers = #tpu.dot_dimension_numbers<[1], [0], [0], [1], [0, 0, 1, 1], [], []>} : vector<8x128xf32>, vector<128x128xf32>, vector<8x128xf32> -> vector<8x128xf32>
    %c0_40 = arith.constant 0 : index
    %c0_41 = arith.constant 0 : index
    %50 = vector.load %arg14[%c0_40, %c0_41] : memref<1x128xf32, #tpu.memory_space<vmem>>, vector<1x128xf32>
    %51 = vector.broadcast %50 : vector<1x128xf32> to vector<8x128xf32>
    %52 = arith.addf %49, %51 : vector<8x128xf32>
    %cst_42 = arith.constant 0.000000e+00 : f32
    %53 = vector.broadcast %cst_42 : f32 to vector<8x128xf32>
    %54 = arith.maximumf %52, %53 : vector<8x128xf32>
    %c0_43 = arith.constant 0 : index
    %c0_44 = arith.constant 0 : index
    %55 = vector.load %arg15[%c0_43, %c0_44] : memref<128x128xf32, #tpu.memory_space<vmem>>, vector<128x128xf32>
    %cst_45 = arith.constant dense<0.000000e+00> : vector<8x128xf32>
    %56 = tpu.matmul %54, %55, %cst_45 {dimension_numbers = #tpu.dot_dimension_numbers<[1], [0], [0], [1], [0, 0, 1, 1], [], []>} : vector<8x128xf32>, vector<128x128xf32>, vector<8x128xf32> -> vector<8x128xf32>
    %c0_46 = arith.constant 0 : index
    %c0_47 = arith.constant 0 : index
    %57 = vector.load %arg16[%c0_46, %c0_47] : memref<1x128xf32, #tpu.memory_space<vmem>>, vector<1x128xf32>
    %58 = vector.broadcast %57 : vector<1x128xf32> to vector<8x128xf32>
    %59 = arith.addf %56, %58 : vector<8x128xf32>
    %60 = arith.negf %59 : vector<8x128xf32>
    %61 = math.exp %60 : vector<8x128xf32>
    %cst_48 = arith.constant 1.000000e+00 : f32
    %62 = vector.broadcast %cst_48 : f32 to vector<8x128xf32>
    %63 = arith.addf %62, %61 : vector<8x128xf32>
    %64 = arith.divf %62, %63 : vector<8x128xf32>
    %c0_49 = arith.constant 0 : index
    %c0_50 = arith.constant 0 : index
    %65 = vector.load %arg17[%c0_49, %c0_50] : memref<128x128xf32, #tpu.memory_space<vmem>>, vector<128x128xf32>
    %cst_51 = arith.constant dense<0.000000e+00> : vector<8x128xf32>
    %66 = tpu.matmul %64, %65, %cst_51 {dimension_numbers = #tpu.dot_dimension_numbers<[1], [0], [0], [1], [0, 0, 1, 1], [], []>} : vector<8x128xf32>, vector<128x128xf32>, vector<8x128xf32> -> vector<8x128xf32>
    %c0_52 = arith.constant 0 : index
    %c0_53 = arith.constant 0 : index
    %67 = vector.load %arg18[%c0_52, %c0_53] : memref<1x128xf32, #tpu.memory_space<vmem>>, vector<1x128xf32>
    %68 = vector.broadcast %67 : vector<1x128xf32> to vector<8x128xf32>
    %69 = arith.addf %66, %68 : vector<8x128xf32>
    %70 = arith.negf %69 : vector<8x128xf32>
    %71 = math.exp %70 : vector<8x128xf32>
    %cst_54 = arith.constant 1.000000e+00 : f32
    %72 = vector.broadcast %cst_54 : f32 to vector<8x128xf32>
    %73 = arith.addf %72, %71 : vector<8x128xf32>
    %74 = arith.divf %72, %73 : vector<8x128xf32>
    %75 = arith.mulf %69, %74 : vector<8x128xf32>
    %c0_55 = arith.constant 0 : index
    %c0_56 = arith.constant 0 : index
    %76 = vector.load %arg19[%c0_55, %c0_56] : memref<128x128xf32, #tpu.memory_space<vmem>>, vector<128x128xf32>
    %cst_57 = arith.constant dense<0.000000e+00> : vector<8x128xf32>
    %77 = tpu.matmul %75, %76, %cst_57 {dimension_numbers = #tpu.dot_dimension_numbers<[1], [0], [0], [1], [0, 0, 1, 1], [], []>} : vector<8x128xf32>, vector<128x128xf32>, vector<8x128xf32> -> vector<8x128xf32>
    %c0_58 = arith.constant 0 : index
    %c0_59 = arith.constant 0 : index
    %78 = vector.load %arg20[%c0_58, %c0_59] : memref<1x128xf32, #tpu.memory_space<vmem>>, vector<1x128xf32>
    %79 = vector.broadcast %78 : vector<1x128xf32> to vector<8x128xf32>
    %80 = arith.addf %77, %79 : vector<8x128xf32>
    %81 = arith.negf %80 : vector<8x128xf32>
    %82 = math.exp %81 : vector<8x128xf32>
    %cst_60 = arith.constant 1.000000e+00 : f32
    %83 = vector.broadcast %cst_60 : f32 to vector<8x128xf32>
    %84 = arith.addf %83, %82 : vector<8x128xf32>
    %85 = arith.divf %83, %84 : vector<8x128xf32>
    %c0_61 = arith.constant 0 : index
    %c0_62 = arith.constant 0 : index
    %86 = vector.load %arg21[%c0_61, %c0_62] : memref<8x128xf32, #tpu.memory_space<vmem>>, vector<8x128xf32>
    tpu.vector_store %arg21[%c0_61, %c0_62], %85 {strides = array<i32>} : memref<8x128xf32, #tpu.memory_space<vmem>>, vector<8x128xf32>,
    return
  }
  func.func @transform_0(%arg0: i32) -> (i32, i32) {
    %c0_i32 = arith.constant 0 : i32
    %c0_i32_0 = arith.constant 0 : i32
    return %arg0, %c0_i32 : i32, i32
  }
  func.func @transform_1(%arg0: i32) -> (i32, i32) {
    %c0_i32 = arith.constant 0 : i32
    %c0_i32_0 = arith.constant 0 : i32
    return %arg0, %c0_i32 : i32, i32
  }
  func.func @transform_2(%arg0: i32) -> (i32, i32) {
    %c0_i32 = arith.constant 0 : i32
    %c0_i32_0 = arith.constant 0 : i32
    %c0_i32_1 = arith.constant 0 : i32
    return %c0_i32, %c0_i32_0 : i32, i32
  }
  func.func @transform_3(%arg0: i32) -> (i32, i32) {
    %c0_i32 = arith.constant 0 : i32
    %c0_i32_0 = arith.constant 0 : i32
    %c0_i32_1 = arith.constant 0 : i32
    return %c0_i32, %c0_i32_0 : i32, i32
  }
  func.func @transform_4(%arg0: i32) -> (i32, i32) {
    %c0_i32 = arith.constant 0 : i32
    %c0_i32_0 = arith.constant 0 : i32
    %c0_i32_1 = arith.constant 0 : i32
    return %c0_i32, %c0_i32_0 : i32, i32
  }
  func.func @transform_5(%arg0: i32) -> (i32, i32) {
    %c0_i32 = arith.constant 0 : i32
    %c0_i32_0 = arith.constant 0 : i32
    %c0_i32_1 = arith.constant 0 : i32
    return %c0_i32, %c0_i32_0 : i32, i32
  }
  func.func @transform_6(%arg0: i32) -> (i32, i32) {
    %c0_i32 = arith.constant 0 : i32
    %c0_i32_0 = arith.constant 0 : i32
    %c0_i32_1 = arith.constant 0 : i32
    return %c0_i32, %c0_i32_0 : i32, i32
  }
  func.func @transform_7(%arg0: i32) -> (i32, i32) {
    %c0_i32 = arith.constant 0 : i32
    %c0_i32_0 = arith.constant 0 : i32
    %c0_i32_1 = arith.constant 0 : i32
    return %c0_i32, %c0_i32_0 : i32, i32
  }
  func.func @transform_8(%arg0: i32) -> (i32, i32) {
    %c0_i32 = arith.constant 0 : i32
    %c0_i32_0 = arith.constant 0 : i32
    %c0_i32_1 = arith.constant 0 : i32
    return %c0_i32, %c0_i32_0 : i32, i32
  }
  func.func @transform_9(%arg0: i32) -> (i32, i32) {
    %c0_i32 = arith.constant 0 : i32
    %c0_i32_0 = arith.constant 0 : i32
    %c0_i32_1 = arith.constant 0 : i32
    return %c0_i32, %c0_i32_0 : i32, i32
  }
  func.func @transform_10(%arg0: i32) -> (i32, i32) {
    %c0_i32 = arith.constant 0 : i32
    %c0_i32_0 = arith.constant 0 : i32
    %c0_i32_1 = arith.constant 0 : i32
    return %c0_i32, %c0_i32_0 : i32, i32
  }
  func.func @transform_11(%arg0: i32) -> (i32, i32) {
    %c0_i32 = arith.constant 0 : i32
    %c0_i32_0 = arith.constant 0 : i32
    %c0_i32_1 = arith.constant 0 : i32
    return %c0_i32, %c0_i32_0 : i32, i32
  }
  func.func @transform_12(%arg0: i32) -> (i32, i32) {
    %c0_i32 = arith.constant 0 : i32
    %c0_i32_0 = arith.constant 0 : i32
    %c0_i32_1 = arith.constant 0 : i32
    return %c0_i32, %c0_i32_0 : i32, i32
  }
  func.func @transform_13(%arg0: i32) -> (i32, i32) {
    %c0_i32 = arith.constant 0 : i32
    %c0_i32_0 = arith.constant 0 : i32
    %c0_i32_1 = arith.constant 0 : i32
    return %c0_i32, %c0_i32_0 : i32, i32
  }
  func.func @transform_14(%arg0: i32) -> (i32, i32) {
    %c0_i32 = arith.constant 0 : i32
    %c0_i32_0 = arith.constant 0 : i32
    %c0_i32_1 = arith.constant 0 : i32
    return %c0_i32, %c0_i32_0 : i32, i32
  }
  func.func @transform_15(%arg0: i32) -> (i32, i32) {
    %c0_i32 = arith.constant 0 : i32
    %c0_i32_0 = arith.constant 0 : i32
    %c0_i32_1 = arith.constant 0 : i32
    return %c0_i32, %c0_i32_0 : i32, i32
  }
  func.func @transform_16(%arg0: i32) -> (i32, i32) {
    %c0_i32 = arith.constant 0 : i32
    %c0_i32_0 = arith.constant 0 : i32
    %c0_i32_1 = arith.constant 0 : i32
    return %c0_i32, %c0_i32_0 : i32, i32
  }
  func.func @transform_17(%arg0: i32) -> (i32, i32) {
    %c0_i32 = arith.constant 0 : i32
    %c0_i32_0 = arith.constant 0 : i32
    %c0_i32_1 = arith.constant 0 : i32
    return %c0_i32, %c0_i32_0 : i32, i32
  }
  func.func @transform_18(%arg0: i32) -> (i32, i32) {
    %c0_i32 = arith.constant 0 : i32
    %c0_i32_0 = arith.constant 0 : i32
    %c0_i32_1 = arith.constant 0 : i32
    return %c0_i32, %c0_i32_0 : i32, i32
  }
  func.func @transform_19(%arg0: i32) -> (i32, i32) {
    %c0_i32 = arith.constant 0 : i32
    %c0_i32_0 = arith.constant 0 : i32
    %c0_i32_1 = arith.constant 0 : i32
    return %c0_i32, %c0_i32_0 : i32, i32
  }
  func.func @transform_20(%arg0: i32) -> (i32, i32) {
    %c0_i32 = arith.constant 0 : i32
    %c0_i32_0 = arith.constant 0 : i32
    return %arg0, %c0_i32 : i32, i32
  }
  func.func @transform_21(%arg0: i32) -> (i32, i32) {
    %c0_i32 = arith.constant 0 : i32
    %c0_i32_0 = arith.constant 0 : i32
    return %arg0, %c0_i32 : i32, i32
  }
  func.func @transform_22(%arg0: i32) -> (i32, i32) {
    %c0_i32 = arith.constant 0 : i32
    %c0_i32_0 = arith.constant 0 : i32
    return %arg0, %c0_i32 : i32, i32
  }
  func.func @transform_23(%arg0: i32) -> (i32, i32) {
    %c0_i32 = arith.constant 0 : i32
    %c0_i32_0 = arith.constant 0 : i32
    return %arg0, %c0_i32 : i32, i32
  }
}

</mosaic_0001>

<bundles_post_ra>
// kernel: vae_forward.1
= control target key start
LH: loop header
LB: loop body
LE: loop exit
PB: predicated region body
PF: predicated region fallthrough
CT: control target
= control target key end

     0   :  { %s2560_s0 = inlined_call_operand.vmem [shape: f32[8,128], index: 0, kind: input, shape index: {}]   ;;  %s2561_s1 = inlined_call_operand.vmem [shape: f32[8,128], index: 1, kind: input, shape index: {}]   ;;  %s2562_s2 = inlined_call_operand.vmem [shape: f32[128,128], index: 2, kind: input, shape index: {}]   ;;  %s2563_s3 = inlined_call_operand.vmem [shape: f32[1,128], index: 3, kind: input, shape index: {}]   ;;  %s2564_s4 = inlined_call_operand.vmem [shape: f32[128,128], index: 4, kind: input, shape index: {}]   ;;  %s2565_s5 = inlined_call_operand.vmem [shape: f32[1,128], index: 5, kind: input, shape index: {}]   ;;  %s2566_s6 = inlined_call_operand.vmem [shape: f32[128,128], index: 6, kind: input, shape index: {}]   ;;  %s2567_s7 = inlined_call_operand.vmem [shape: f32[1,128], index: 7, kind: input, shape index: {}]   ;;  %s2568_s8 = inlined_call_operand.vmem [shape: f32[128,128], index: 8, kind: input, shape index: {}]   ;;  %s2569_s9 = inlined_call_operand.vmem [shape: f32[1,128], index: 9, kind: input, shape index: {}]   ;;  %s2570_s10 = inlined_call_operand.vmem [shape: f32[128,128], index: 10, kind: input, shape index: {}]   ;;  %s2571_s11 = inlined_call_operand.vmem [shape: f32[1,128], index: 11, kind: input, shape index: {}]   ;;  %s2572_s12 = inlined_call_operand.vmem [shape: f32[128,128], index: 12, kind: input, shape index: {}]   ;;  %s2573_s13 = inlined_call_operand.vmem [shape: f32[1,128], index: 13, kind: input, shape index: {}]   ;;  %s2574_s14 = inlined_call_operand.vmem [shape: f32[128,128], index: 14, kind: input, shape index: {}]   ;;  %s2575_s15 = inlined_call_operand.vmem [shape: f32[1,128], index: 15, kind: input, shape index: {}]   ;;  %s2576_s16 = inlined_call_operand.vmem [shape: f32[128,128], index: 16, kind: input, shape index: {}]   ;;  %s2577_s17 = inlined_call_operand.vmem [shape: f32[1,128], index: 17, kind: input, shape index: {}]   ;;  %s2578_s18 = inlined_call_operand.vmem [shape: f32[128,128], index: 18, kind: input, shape index: {}]   ;;  %s2579_s19 = inlined_call_operand.vmem [shape: f32[1,128], index: 19, kind: input, shape index: {}]   ;;  %s2580_s20 = inlined_call_operand.hbm [shape: f32[8,128], index: 20, kind: output, shape index: {0}]   ;;  %s2581_s21 = inlined_call_operand.hbm [shape: f32[8,128], index: 21, kind: output, shape index: {1}]   ;;  %s2582_s22 = inlined_call_operand.hbm [shape: f32[8,128], index: 22, kind: output, shape index: {2}]   ;;  %s2583_s23 = inlined_call_operand.hbm [shape: f32[8,128], index: 23, kind: output, shape index: {3}]  }
   0x1   :  { %2587 = sst [smem:[#allocation12_spill]] %s2560_s0 }
   0x2   :  { %2588 = sst [smem:[#allocation13_spill]] %s2561_s1 }
   0x3   :  { %2589 = sst [smem:[#allocation14_spill]] %s2562_s2 }
   0x4   :  { %2590 = sst [smem:[#allocation15_spill]] %s2563_s3 }
   0x5   :  { %2591 = sst [smem:[#allocation16_spill]] %s2564_s4 }
   0x6   :  { %2592 = sst [smem:[#allocation17_spill]] %s2565_s5 }
   0x7   :  { %2593 = sst [smem:[#allocation18_spill]] %s2566_s6 }
   0x8   :  { %2594 = sst [smem:[#allocation19_spill]] %s2567_s7 }
   0x9   :  { %29 = vsyncpa [#allocation3], 0 }
   0xa   :  { %30 = vsyncpa [#allocation5], 0  ;;  %s2595_s24 = sld [smem:[#allocation14_spill]]  ;;  %v1830_v3 = vmov 0.0|0.0   ;;  %vm1831_vm0 = vmmov 0   ;;  %v1832_v6 = vmov 0.0  }
   0xb   :  { %1491 = vmatprep.subr.bf16.mxu0 %v1830_v3  ;;  %1208 = vmatprep.mubr.msk.f32.mxu0 %vm1831_vm0, %v1832_v6  ;;  %s2596_s4 = sld [smem:[#allocation16_spill]] }
   0xc   :  { %1515 = vmatprep.subr.bf16.mxu1 %v1830_v3  ;;  %1243 = vmatprep.mubr.msk.f32.mxu1 %vm1831_vm0, %v1832_v6 }
  0x10   :  { %v73_v0 = vld [vmem:[%s2595_s24] sm:$0xff]  ;;  %v74_v1 = vld [vmem:[%s2595_s24 + $0x8] sm:$0xff]  ;;  %v75_v2 = vld [vmem:[%s2595_s24 + $0x10] sm:$0xff] }
  0x11   :  { %v1492_v4 = vpack.c.bf16 %v74_v1, %v73_v0  ;;  %v76_v5 = vld [vmem:[%s2595_s24 + $0x18] sm:$0xff]  ;;  %v77_v8 = vld [vmem:[%s2595_s24 + $0x20] sm:$0xff]  ;;  %v78_v9 = vld [vmem:[%s2595_s24 + $0x28] sm:$0xff] }
  0x12   :  { %v1495_v7 = vpack.c.bf16 %v76_v5, %v75_v2  ;;  %v167_v10 = vld [vmem:[%s2596_s4] sm:$0xff]  ;;  %v168_v11 = vld [vmem:[%s2596_s4 + $0x8] sm:$0xff]  ;;  %v169_v12 = vld [vmem:[%s2596_s4 + $0x10] sm:$0xff]  ;;  %v1498_v14 = vpack.c.bf16 %v78_v9, %v77_v8 }
  0x13   :  { %1493 = vmatpush3.bf16.msra.mxu0 %v1492_v4  ;;  %v170_v13 = vld [vmem:[%s2596_s4 + $0x18] sm:$0xff]  ;;  %v1516_v15 = vpack.c.bf16 %v168_v11, %v167_v10  ;;  %v79_v16 = vld [vmem:[%s2595_s24 + $0x30] sm:$0xff]  ;;  %v171_v19 = vld [vmem:[%s2596_s4 + $0x20] sm:$0xff] }
  0x14   :  { %1494 = vmatprep.subr.bf16.mxu0 %v1830_v3  ;;  %v80_v17 = vld [vmem:[%s2595_s24 + $0x38] sm:$0xff]  ;;  %v1519_v18 = vpack.c.bf16 %v170_v13, %v169_v12  ;;  %v172_v20 = vld [vmem:[%s2596_s4 + $0x28] sm:$0xff] }
  0x15   :  { %1517 = vmatpush3.bf16.msra.mxu1 %v1516_v15 }
  0x16   :  { %1518 = vmatprep.subr.bf16.mxu1 %v1830_v3 }
  0x17   :  { %1496 = vmatpush3.bf16.msra.mxu0 %v1495_v7 }
  0x18   :  { %1497 = vmatprep.subr.bf16.mxu0 %v1830_v3 }
  0x19   :  { %31 = vsyncpa [#allocation8], 0  ;;  %v1501_v21 = vpack.c.bf16 %v80_v17, %v79_v16  ;;  %v81_v22 = vld [vmem:[%s2595_s24 + $0x40] sm:$0xff]  ;;  %v82_v23 = vld [vmem:[%s2595_s24 + $0x48] sm:$0xff]  ;;  %1520 = vmatpush3.bf16.msra.mxu1 %v1519_v18  ;;  %v1522_v24 = vpack.c.bf16 %v172_v20, %v171_v19  ;;  %s2597_s7 = sld [smem:[#allocation12_spill]]  ;;  %s2598_s5 = sld [smem:[#allocation18_spill]] }
  0x1a   :  { %1521 = vmatprep.subr.bf16.mxu1 %v1830_v3  ;;  %v173_v25 = vld [vmem:[%s2596_s4 + $0x30] sm:$0xff]  ;;  %v174_v26 = vld [vmem:[%s2596_s4 + $0x38] sm:$0xff]  ;;  %v1504_v27 = vpack.c.bf16 %v82_v23, %v81_v22  ;;  %v175_v31 = vld [vmem:[%s2596_s4 + $0x40] sm:$0xff]  ;;  %s2601_s30 = sld [smem:[#allocation19_spill]]  ;;  %s2602_s3 = sld [smem:[#allocation13_spill]] }
  0x1b   :  { %1499 = vmatpush3.bf16.msra.mxu0 %v1498_v14  ;;  %v83_v28 = vld [vmem:[%s2595_s24 + $0x50] sm:$0xff]  ;;  %v84_v29 = vld [vmem:[%s2595_s24 + $0x58] sm:$0xff]  ;;  %v1525_v30 = vpack.c.bf16 %v174_v26, %v173_v25  ;;  %v176_v32 = vld [vmem:[%s2596_s4 + $0x48] sm:$0xff] }
  0x1c   :  { %1500 = vmatprep.subr.bf16.mxu0 %v1830_v3  ;;  %v1507_v33 = vpack.c.bf16 %v84_v29, %v83_v28  ;;  %v85_v34 = vld [vmem:[%s2595_s24 + $0x60] sm:$0xff]  ;;  %v86_v35 = vld [vmem:[%s2595_s24 + $0x68] sm:$0xff]  ;;  %v1528_v36 = vpack.c.bf16 %v176_v32, %v175_v31  ;;  %v177_v37 = vld [vmem:[%s2596_s4 + $0x50] sm:$0xff] }
  0x1d   :  { %1523 = vmatpush3.bf16.msra.mxu1 %v1522_v24  ;;  %v178_v38 = vld [vmem:[%s2596_s4 + $0x58] sm:$0xff]  ;;  %v1510_v39 = vpack.c.bf16 %v86_v35, %v85_v34  ;;  %v87_v40 = vld [vmem:[%s2595_s24 + $0x70] sm:$0xff]  ;;  %v179_v43 = vld [vmem:[%s2596_s4 + $0x60] sm:$0xff] }
  0x1e   :  { %1524 = vmatprep.subr.bf16.mxu1 %v1830_v3  ;;  %v88_v41 = vld [vmem:[%s2595_s24 + $0x78] sm:$0xff]  ;;  %v1531_v42 = vpack.c.bf16 %v178_v38, %v177_v37  ;;  %v180_v44 = vld [vmem:[%s2596_s4 + $0x68] sm:$0xff]  ;;  %v181_v48 = vld [vmem:[%s2596_s4 + $0x70] sm:$0xff]  ;;  %s2599_s24 = sld [smem:[#allocation15_spill]] }
  0x1f   :  { %1502 = vmatpush3.bf16.msra.mxu0 %v1501_v21  ;;  %v1513_v45 = vpack.c.bf16 %v88_v41, %v87_v40  ;;  %v1534_v46 = vpack.c.bf16 %v180_v44, %v179_v43  ;;  %v72_v47 = vld [vmem:[%s2597_s7] sm:$0xff]  ;;  %v182_v49 = vld [vmem:[%s2596_s4 + $0x78] sm:$0xff]  ;;  %v267_v52 = vld [vmem:[%s2598_s5 + $0x8] sm:$0xff]  ;;  %s2600_s7 = sld [smem:[#allocation17_spill]] }
  0x20   :  { %1503 = vmatprep.subr.bf16.mxu0 %v1830_v3  ;;  %v1537_v50 = vpack.c.bf16 %v182_v49, %v181_v48  ;;  %v266_v51 = vld [vmem:[%s2598_s5] sm:$0xff]  ;;  %v268_v59 = vld [vmem:[%s2598_s5 + $0x10] sm:$0xff]  ;;  %v269_v60 = vld [vmem:[%s2598_s5 + $0x18] sm:$0xff] }
  0x21   :  { %1526 = vmatpush3.bf16.msra.mxu1 %v1525_v30  ;;  %v1540_v53 = vpack.c.bf16 %v267_v52, %v266_v51  ;;  %v1543_v61 = vpack.c.bf16 %v269_v60, %v268_v59  ;;  %v270_v62 = vld [vmem:[%s2598_s5 + $0x20] sm:$0xff]  ;;  %v271_v63 = vld [vmem:[%s2598_s5 + $0x28] sm:$0xff]  ;;  %v272_v1 = vld [vmem:[%s2598_s5 + $0x30] sm:$0xff] }
  0x22   :  { %1527 = vmatprep.subr.bf16.mxu1 %v1830_v3  ;;  %v1546_v0 = vpack.c.bf16 %v271_v63, %v270_v62  ;;  %v273_v2 = vld [vmem:[%s2598_s5 + $0x38] sm:$0xff]  ;;  %v274_v5 = vld [vmem:[%s2598_s5 + $0x40] sm:$0xff]  ;;  %v275_v7 = vld [vmem:[%s2598_s5 + $0x48] sm:$0xff] }
  0x23   :  { %1505 = vmatpush3.bf16.msra.mxu0 %v1504_v27  ;;  %v1549_v4 = vpack.c.bf16 %v273_v2, %v272_v1  ;;  %v1552_v8 = vpack.c.bf16 %v275_v7, %v274_v5  ;;  %v276_v9 = vld [vmem:[%s2598_s5 + $0x50] sm:$0xff]  ;;  %v277_v10 = vld [vmem:[%s2598_s5 + $0x58] sm:$0xff]  ;;  %v278_v12 = vld [vmem:[%s2598_s5 + $0x60] sm:$0xff] }
  0x24   :  { %1506 = vmatprep.subr.bf16.mxu0 %v1830_v3  ;;  %v1009_v54 = vld [vmem:[%s2599_s24] ss:$0 sm:$0xff]  ;;  %v1555_v11 = vpack.c.bf16 %v277_v10, %v276_v9  ;;  %v279_v13 = vld [vmem:[%s2598_s5 + $0x68] sm:$0xff]  ;;  %v280_v15 = vld [vmem:[%s2598_s5 + $0x70] sm:$0xff] }
  0x25   :  { %1529 = vmatpush3.bf16.msra.mxu1 %v1528_v36  ;;  %v1558_v14 = vpack.c.bf16 %v279_v13, %v278_v12  ;;  %v281_v16 = vld [vmem:[%s2598_s5 + $0x78] sm:$0xff]  ;;  %v1010_v18 = vld [vmem:[%s2600_s7] ss:$0 sm:$0xff]  ;;  %v367_v27 = vld [vmem:[%s2568_s8 + $0x8] sm:$0xff] }
  0x26   :  { %1530 = vmatprep.subr.bf16.mxu1 %v1830_v3  ;;  %v1561_v17 = vpack.c.bf16 %v281_v16, %v280_v15  ;;  %v366_v26 = vld [vmem:[%s2568_s8] sm:$0xff]  ;;  %v460_v30 = vld [vmem:[%s2570_s10 + $0x8] sm:$0xff]  ;;  %v368_v32 = vld [vmem:[%s2568_s8 + $0x10] sm:$0xff] }
  0x27   :  { %1508 = vmatpush3.bf16.msra.mxu0 %v1507_v33  ;;  %v459_v28 = vld [vmem:[%s2570_s10] sm:$0xff]  ;;  %v1564_v29 = vpack.c.bf16 %v367_v27, %v366_v26  ;;  %v369_v33 = vld [vmem:[%s2568_s8 + $0x18] sm:$0xff]  ;;  %v461_v34 = vld [vmem:[%s2570_s10 + $0x10] sm:$0xff] }
  0x28   :  { %1509 = vmatprep.subr.bf16.mxu0 %v1830_v3  ;;  %v1588_v31 = vpack.c.bf16 %v460_v30, %v459_v28  ;;  %v1567_v35 = vpack.c.bf16 %v369_v33, %v368_v32  ;;  %v462_v36 = vld [vmem:[%s2570_s10 + $0x18] sm:$0xff]  ;;  %v370_v38 = vld [vmem:[%s2568_s8 + $0x20] sm:$0xff]  ;;  %v372_v44 = vld [vmem:[%s2568_s8 + $0x30] sm:$0xff] }
  0x29   :  { %1532 = vmatpush3.bf16.msra.mxu1 %v1531_v42  ;;  %v1591_v37 = vpack.c.bf16 %v462_v36, %v461_v34  ;;  %v463_v40 = vld [vmem:[%s2570_s10 + $0x20] sm:$0xff]  ;;  %v464_v42 = vld [vmem:[%s2570_s10 + $0x28] sm:$0xff]  ;;  %v466_v48 = vld [vmem:[%s2570_s10 + $0x38] sm:$0xff] }
  0x2a   :  { %1533 = vmatprep.subr.bf16.mxu1 %v1830_v3  ;;  %v1594_v43 = vpack.c.bf16 %v464_v42, %v463_v40  ;;  %v375_v51 = vld [vmem:[%s2568_s8 + $0x48] sm:$0xff]  ;;  %v467_v52 = vld [vmem:[%s2570_s10 + $0x40] sm:$0xff]  ;;  %v470_v60 = vld [vmem:[%s2570_s10 + $0x58] sm:$0xff] }
  0x2b   :  { %1511 = vmatpush3.bf16.msra.mxu0 %v1510_v39  ;;  %v371_v39 = vld [vmem:[%s2568_s8 + $0x28] sm:$0xff]  ;;  %v378_v62 = vld [vmem:[%s2568_s8 + $0x60] sm:$0xff]  ;;  %v380_v5 = vld [vmem:[%s2568_s8 + $0x70] sm:$0xff] }
  0x2c   :  { %1512 = vmatprep.subr.bf16.mxu0 %v1830_v3  ;;  %v1570_v41 = vpack.c.bf16 %v371_v39, %v370_v38  ;;  %v379_v63 = vld [vmem:[%s2568_s8 + $0x68] sm:$0xff]  ;;  %v381_v7 = vld [vmem:[%s2568_s8 + $0x78] sm:$0xff]  ;;  %v1012_v12 = vld [vmem:[%s2601_s30] ss:$0 sm:$0xff]  ;;  %s1833_s30 = smov [#allocation4]  }
  0x2d   :  { %1535 = vmatpush3.bf16.msra.mxu1 %v1534_v46  ;;  %v465_v46 = vld [vmem:[%s2570_s10 + $0x30] sm:$0xff]  ;;  %v1582_v1 = vpack.c.bf16 %v379_v63, %v378_v62  ;;  %v472_v2 = vld [vmem:[%s2570_s10 + $0x68] sm:$0xff]  ;;  %v1585_v9 = vpack.c.bf16 %v381_v7, %v380_v5  ;;  %v474_v10 = vld [vmem:[%s2570_s10 + $0x78] sm:$0xff] }
  0x2e   :  { %1536 = vmatprep.subr.bf16.mxu1 %v1830_v3  ;;  %v1597_v49 = vpack.c.bf16 %v466_v48, %v465_v46  ;;  %v565_v27 = vld [vmem:[%s2572_s12 + $0x20] sm:$0xff]  ;;  %v566_v28 = vld [vmem:[%s2572_s12 + $0x28] sm:$0xff]  ;;  %v567_v30 = vld [vmem:[%s2572_s12 + $0x30] sm:$0xff] }
  0x2f   :  { %1514 = vmatpush3.bf16.msra.mxu0 %v1513_v45  ;;  %v373_v45 = vld [vmem:[%s2568_s8 + $0x38] sm:$0xff]  ;;  %v569_v33 = vld [vmem:[%s2572_s12 + $0x40] sm:$0xff]  ;;  %v570_v34 = vld [vmem:[%s2572_s12 + $0x48] sm:$0xff] }
  0x30   :  { %1539 = vmatprep.subr.bf16.mxu0 %v1830_v3  ;;  %v571_v36 = vld [vmem:[%s2572_s12 + $0x50] sm:$0xff]  ;;  %v573_v39 = vld [vmem:[%s2572_s12 + $0x60] sm:$0xff]  ;;  %v574_v40 = vld [vmem:[%s2572_s12 + $0x68] sm:$0xff] }
  0x31   :  { %1538 = vmatpush3.bf16.msra.mxu1 %v1537_v50  ;;  %v374_v50 = vld [vmem:[%s2568_s8 + $0x40] sm:$0xff]  ;;  %v575_v42 = vld [vmem:[%s2572_s12 + $0x70] sm:$0xff]  ;;  %v656_v46 = vld [vmem:[%s2574_s14 + $0x8] sm:$0xff] }
  0x32   :  { %1209 = vmatmul.mubr.f32.vlgmr.msra.gmra.mrb[0].mxu0 %v72_v47  ;;  %1563 = vmatprep.subr.bf16.mxu1 %v1830_v3  ;;  %v1573_v47 = vpack.c.bf16 %v373_v45, %v372_v44  ;;  %v655_v45 = vld [vmem:[%s2574_s14] sm:$0xff] }
  0x33   :  { %1278 = vmatprep.mubr.msk.f32.mxu0 %vm1831_vm0, %v1832_v6  ;;  %1541 = vmatpush3.bf16.msra.mxu0 %v1540_v53  ;;  %v1576_v53 = vpack.c.bf16 %v375_v51, %v374_v50  ;;  %v1636_v48 = vpack.c.bf16 %v656_v46, %v655_v45  ;;  %v659_v51 = vld [vmem:[%s2574_s14 + $0x20] sm:$0xff]  ;;  %v768_v46 = vld [vmem:[%s2576_s16 + $0x70] sm:$0xff] }
  0x34   :  { %1542 = vmatprep.subr.bf16.mxu0 %v1830_v3  ;;  %v667_v63 = vld [vmem:[%s2574_s14 + $0x60] sm:$0xff] }
  0x37   :  { %1544 = vmatpush3.bf16.msra.mxu0 %v1543_v61 }
  0x38   :  { %1545 = vmatprep.subr.bf16.mxu0 %v1830_v3 }
  0x3b   :  { %1547 = vmatpush3.bf16.msra.mxu0 %v1546_v0  ;;  %v471_v0 = vld [vmem:[%s2570_s10 + $0x60] sm:$0xff] }
  0x3c   :  { %1548 = vmatprep.subr.bf16.mxu0 %v1830_v3 }
  0x3f   :  { %1550 = vmatpush3.bf16.msra.mxu0 %v1549_v4  ;;  %v1606_v4 = vpack.c.bf16 %v472_v2, %v471_v0  ;;  %v668_v0 = vld [vmem:[%s2574_s14 + $0x68] sm:$0xff]  ;;  %v1014_v2 = vld [vmem:[%s2569_s9] ss:$0 sm:$0xff] }
  0x40   :  { %1551 = vmatprep.subr.bf16.mxu0 %v1830_v3 }
  0x43   :  { %1553 = vmatpush3.bf16.msra.mxu0 %v1552_v8  ;;  %v473_v8 = vld [vmem:[%s2570_s10 + $0x70] sm:$0xff] }
  0x44   :  { %1554 = vmatprep.subr.bf16.mxu0 %v1830_v3 }
  0x47   :  { %1556 = vmatpush3.bf16.msra.mxu0 %v1555_v11  ;;  %v1609_v11 = vpack.c.bf16 %v474_v10, %v473_v8 }
  0x48   :  { %1557 = vmatprep.subr.bf16.mxu0 %v1830_v3 }
  0x4b   :  { %1559 = vmatpush3.bf16.msra.mxu0 %v1558_v14 }
  0x4c   :  { %1560 = vmatprep.subr.bf16.mxu0 %v1830_v3 }
  0x4f   :  { %1562 = vmatpush3.bf16.msra.mxu0 %v1561_v17 }
  0x50   :  { %1587 = vmatprep.subr.bf16.mxu0 %v1830_v3 }
 0x105   :  { %v162_v55 = vpop.f32.mrb[0].mxu0 }
 0x106   :  { %v163_v56 = vadd.f32 %v1009_v54, %v162_v55  ;;  %v1210_v57 = vpop.f32.mrb[1].mxu0  ;;  %v468_v54 = vld [vmem:[%s2570_s10 + $0x48] sm:$0xff] }
 0x107   :  { %v1600_v55 = vpack.c.bf16 %v468_v54, %v467_v52  ;;  %v377_v57 = vld [vmem:[%s2568_s8 + $0x58] sm:$0xff]  ;;  %v660_v52 = vld [vmem:[%s2574_s14 + $0x28] sm:$0xff]  ;;  %v661_v54 = vld [vmem:[%s2574_s14 + $0x30] sm:$0xff] }
 0x108   :  { %v166_v58 = vmax.f32 %v163_v56, 0.0  ;;  %v376_v56 = vld [vmem:[%s2568_s8 + $0x50] sm:$0xff] }
 0x109   :  { %v1579_v59 = vpack.c.bf16 %v377_v57, %v376_v56  ;;  %v663_v57 = vld [vmem:[%s2574_s14 + $0x40] sm:$0xff] }
 0x10a   :  { %1244 = vmatmul.mubr.f32.vlgmr.msra.gmra.mrb[0].mxu1 %v166_v58  ;;  %v469_v58 = vld [vmem:[%s2570_s10 + $0x50] sm:$0xff]  ;;  %s970_s10 = sshll.u32 %s1833_s30, 4  ;;  %s971_s10 = int_to_ptr.vmem [resolvable:$true] %s970_s10 }
 0x10b   :  { %1313 = vmatprep.mubr.msk.f32.mxu1 %vm1831_vm0, %v1832_v6  ;;  %1565 = vmatpush3.bf16.msra.mxu1 %v1564_v29  ;;  %v1603_v61 = vpack.c.bf16 %v470_v60, %v469_v58  ;;  %v1618_v29 = vpack.c.bf16 %v566_v28, %v565_v27  ;;  %v664_v58 = vld [vmem:[%s2574_s14 + $0x48] sm:$0xff]  ;;  %v665_v60 = vld [vmem:[%s2574_s14 + $0x50] sm:$0xff]  ;;  %p1741_p1 = scmp.lt.s32.totalorder %s971_s10, %s971_s10 }
 0x10c   :  { %1566 = vmatprep.subr.bf16.mxu1 %v1830_v3 }
 0x10f   :  { %1568 = vmatpush3.bf16.msra.mxu1 %v1567_v35  ;;  %v1624_v35 = vpack.c.bf16 %v570_v34, %v569_v33  ;;  %v760_v34 = vld [vmem:[%s2576_s16 + $0x30] sm:$0xff] }
 0x110   :  { %1569 = vmatprep.subr.bf16.mxu1 %v1830_v3 }
 0x113   :  { %1571 = vmatpush3.bf16.msra.mxu1 %v1570_v41  ;;  %v1630_v41 = vpack.c.bf16 %v574_v40, %v573_v39  ;;  %v764_v40 = vld [vmem:[%s2576_s16 + $0x50] sm:$0xff] }
 0x114   :  { %1572 = vmatprep.subr.bf16.mxu1 %v1830_v3 }
 0x117   :  { %1574 = vmatpush3.bf16.msra.mxu1 %v1573_v47  ;;  %v657_v47 = vld [vmem:[%s2574_s14 + $0x10] sm:$0xff] }
 0x118   :  { %1575 = vmatprep.subr.bf16.mxu1 %v1830_v3 }
 0x11b   :  { %1577 = vmatpush3.bf16.msra.mxu1 %v1576_v53  ;;  %v1642_v53 = vpack.c.bf16 %v660_v52, %v659_v51 }
 0x11c   :  { %1578 = vmatprep.subr.bf16.mxu1 %v1830_v3 }
 0x11f   :  { %1580 = vmatpush3.bf16.msra.mxu1 %v1579_v59  ;;  %v1648_v59 = vpack.c.bf16 %v664_v58, %v663_v57  ;;  %v854_v57 = vld [vmem:[%s2578_s18] sm:$0xff]  ;;  %v855_v58 = vld [vmem:[%s2578_s18 + $0x8] sm:$0xff] }
 0x120   :  { %1581 = vmatprep.subr.bf16.mxu1 %v1830_v3 }
 0x123   :  { %1583 = vmatpush3.bf16.msra.mxu1 %v1582_v1  ;;  %v1654_v1 = vpack.c.bf16 %v668_v0, %v667_v63  ;;  %v858_v63 = vld [vmem:[%s2578_s18 + $0x20] sm:$0xff]  ;;  %v859_v0 = vld [vmem:[%s2578_s18 + $0x28] sm:$0xff] }
 0x124   :  { %1584 = vmatprep.subr.bf16.mxu1 %v1830_v3 }
 0x127   :  { %1586 = vmatpush3.bf16.msra.mxu1 %v1585_v9 }
 0x128   :  { %1611 = vmatprep.subr.bf16.mxu1 %v1830_v3 }
 0x1dd   :  { %v256_v19 = vpop.f32.mrb[0].mxu1 }
 0x1de   :  { %v257_v20 = vadd.f32 %v1010_v18, %v256_v19  ;;  %v1245_v21 = vpop.f32.mrb[1].mxu1  ;;  %v561_v19 = vld [vmem:[%s2572_s12] sm:$0xff] }
 0x1e0   :  { %v1011_v22 = vmul.f32 -1.442695, %v257_v20  ;;  %v562_v20 = vld [vmem:[%s2572_s12 + $0x8] sm:$0xff] }
 0x1e2   :  { %1714 = vpow2.f32 %v1011_v22  ;;  %v1612_v22 = vpack.c.bf16 %v562_v20, %v561_v19  ;;  %v670_v19 = vld [vmem:[%s2574_s14 + $0x78] sm:$0xff] }
 0x1ec   :  { %v1715_v23 = vpop.eup %1714 }
 0x1ed   :  { %v263_v24 = vadd.f32 1.0, %v1715_v23 }
 0x1ef   :  { %1716 = vrcp.f32 %v263_v24  ;;  %v563_v24 = vld [vmem:[%s2572_s12 + $0x10] sm:$0xff] }
 0x1f9   :  { %v1717_v25 = vpop.eup %1716 }
 0x1fa   :  { %1279 = vmatmul.mubr.f32.vlgmr.msra.gmra.mrb[2].mxu0 %v1717_v25  ;;  %v564_v25 = vld [vmem:[%s2572_s12 + $0x18] sm:$0xff] }
 0x1fb   :  { %1348 = vmatprep.mubr.msk.f32.mxu0 %vm1831_vm0, %v1832_v6  ;;  %1589 = vmatpush3.bf16.msra.mxu0 %v1588_v31  ;;  %v1615_v26 = vpack.c.bf16 %v564_v25, %v563_v24  ;;  %v568_v31 = vld [vmem:[%s2572_s12 + $0x38] sm:$0xff]  ;;  %v1016_v24 = vld [vmem:[%s2573_s13] ss:$0 sm:$0xff] }
 0x1fc   :  { %1590 = vmatprep.subr.bf16.mxu0 %v1830_v3  ;;  %v1621_v32 = vpack.c.bf16 %v568_v31, %v567_v30  ;;  %v757_v30 = vld [vmem:[%s2576_s16 + $0x18] sm:$0xff] }
 0x1ff   :  { %1592 = vmatpush3.bf16.msra.mxu0 %v1591_v37  ;;  %v572_v37 = vld [vmem:[%s2572_s12 + $0x58] sm:$0xff] }
 0x200   :  { %1593 = vmatprep.subr.bf16.mxu0 %v1830_v3  ;;  %v1627_v38 = vpack.c.bf16 %v572_v37, %v571_v36  ;;  %v762_v37 = vld [vmem:[%s2576_s16 + $0x40] sm:$0xff] }
 0x203   :  { %1595 = vmatpush3.bf16.msra.mxu0 %v1594_v43  ;;  %v576_v43 = vld [vmem:[%s2572_s12 + $0x78] sm:$0xff] }
 0x204   :  { %1596 = vmatprep.subr.bf16.mxu0 %v1830_v3  ;;  %v1633_v44 = vpack.c.bf16 %v576_v43, %v575_v42  ;;  %v766_v43 = vld [vmem:[%s2576_s16 + $0x60] sm:$0xff] }
 0x207   :  { %1598 = vmatpush3.bf16.msra.mxu0 %v1597_v49  ;;  %v658_v49 = vld [vmem:[%s2574_s14 + $0x18] sm:$0xff] }
 0x208   :  { %1599 = vmatprep.subr.bf16.mxu0 %v1830_v3  ;;  %v1639_v50 = vpack.c.bf16 %v658_v49, %v657_v47  ;;  %v769_v47 = vld [vmem:[%s2576_s16 + $0x78] sm:$0xff]  ;;  %v1017_v49 = vld [vmem:[%s2575_s15] ss:$0 sm:$0xff] }
 0x20b   :  { %1601 = vmatpush3.bf16.msra.mxu0 %v1600_v55  ;;  %v662_v55 = vld [vmem:[%s2574_s14 + $0x38] sm:$0xff] }
 0x20c   :  { %1602 = vmatprep.subr.bf16.mxu0 %v1830_v3  ;;  %v1645_v56 = vpack.c.bf16 %v662_v55, %v661_v54 }
 0x20f   :  { %1604 = vmatpush3.bf16.msra.mxu0 %v1603_v61  ;;  %v666_v61 = vld [vmem:[%s2574_s14 + $0x58] sm:$0xff] }
 0x210   :  { %1605 = vmatprep.subr.bf16.mxu0 %v1830_v3  ;;  %v1651_v62 = vpack.c.bf16 %v666_v61, %v665_v60  ;;  %v856_v60 = vld [vmem:[%s2578_s18 + $0x10] sm:$0xff]  ;;  %v857_v61 = vld [vmem:[%s2578_s18 + $0x18] sm:$0xff] }
 0x213   :  { %1607 = vmatpush3.bf16.msra.mxu0 %v1606_v4  ;;  %v1015_v4 = vld [vmem:[%s2571_s11] ss:$0 sm:$0xff] }
 0x214   :  { %1608 = vmatprep.subr.bf16.mxu0 %v1830_v3 }
 0x217   :  { %1610 = vmatpush3.bf16.msra.mxu0 %v1609_v11 }
 0x218   :  { %1635 = vmatprep.subr.bf16.mxu0 %v1830_v3 }
 0x2cd   :  { %v355_v13 = vpop.f32.mrb[2].mxu0 }
 0x2ce   :  { %v356_v14 = vadd.f32 %v1012_v12, %v355_v13  ;;  %v1280_v15 = vpop.f32.mrb[3].mxu0 }
 0x2d0   :  { %v1013_v16 = vmul.f32 -1.442695, %v356_v14 }
 0x2d2   :  { %1718 = vpow2.f32 %v1013_v16 }
 0x2dc   :  { %v1719_v17 = vpop.eup %1718 }
 0x2dd   :  { %v362_v18 = vadd.f32 1.0, %v1719_v17 }
 0x2df   :  { %1720 = vrcp.f32 %v362_v18  ;;  %v669_v18 = vld [vmem:[%s2574_s14 + $0x70] sm:$0xff] }
 0x2e0   :  { %v1657_v20 = vpack.c.bf16 %v670_v19, %v669_v18  ;;  %v1019_v19 = vld [vmem:[%s2577_s17] ss:$0 sm:$0xff] }
 0x2e9   :  { %v1721_v21 = vpop.eup %1720 }
 0x2ea   :  { %v365_v23 = vmul.f32 %v1721_v21, %v356_v14  ;;  %v554_v14 = vld [vmem:[%s2602_s3] sm:$0xff] }
 0x2eb   :  { %v754_v21 = vld [vmem:[%s2576_s16] sm:$0xff] }
 0x2ec   :  { %1314 = vmatmul.mubr.f32.vlgmr.msra.gmra.mrb[2].mxu1 %v365_v23  ;;  %1349 = vmatmul.mubr.f32.vlgmr.msra.gmra.mrb[4].mxu0 %v365_v23 }
 0x2ed   :  { %1613 = vmatpush3.bf16.msra.mxu1 %v1612_v22  ;;  %1383 = vmatprep.mubr.msk.f32.mxu1 %vm1831_vm0, %v1832_v6  ;;  %v755_v22 = vld [vmem:[%s2576_s16 + $0x8] sm:$0xff] }
 0x2ee   :  { %1614 = vmatprep.subr.bf16.mxu1 %v1830_v3  ;;  %1418 = vmatprep.mubr.msk.f32.mxu0 %vm1831_vm0, %v1832_v6  ;;  %v1660_v23 = vpack.c.bf16 %v755_v22, %v754_v21 }
 0x2ef   :  { %1637 = vmatpush3.bf16.msra.mxu0 %v1636_v48  ;;  %v1681_v48 = vpack.c.bf16 %v769_v47, %v768_v46 }
 0x2f0   :  { %1638 = vmatprep.subr.bf16.mxu0 %v1830_v3 }
 0x2f1   :  { %1616 = vmatpush3.bf16.msra.mxu1 %v1615_v26 }
 0x2f2   :  { %1617 = vmatprep.subr.bf16.mxu1 %v1830_v3 }
 0x2f3   :  { %1640 = vmatpush3.bf16.msra.mxu0 %v1639_v50 }
 0x2f4   :  { %1641 = vmatprep.subr.bf16.mxu0 %v1830_v3 }
 0x2f5   :  { %1619 = vmatpush3.bf16.msra.mxu1 %v1618_v29  ;;  %v756_v29 = vld [vmem:[%s2576_s16 + $0x10] sm:$0xff] }
 0x2f6   :  { %1620 = vmatprep.subr.bf16.mxu1 %v1830_v3  ;;  %v1663_v31 = vpack.c.bf16 %v757_v30, %v756_v29 }
 0x2f7   :  { %1643 = vmatpush3.bf16.msra.mxu0 %v1642_v53 }
 0x2f8   :  { %1644 = vmatprep.subr.bf16.mxu0 %v1830_v3 }
 0x2f9   :  { %1622 = vmatpush3.bf16.msra.mxu1 %v1621_v32  ;;  %v758_v32 = vld [vmem:[%s2576_s16 + $0x20] sm:$0xff] }
 0x2fa   :  { %1623 = vmatprep.subr.bf16.mxu1 %v1830_v3 }
 0x2fb   :  { %1646 = vmatpush3.bf16.msra.mxu0 %v1645_v56 }
 0x2fc   :  { %1647 = vmatprep.subr.bf16.mxu0 %v1830_v3 }
 0x2fd   :  { %1625 = vmatpush3.bf16.msra.mxu1 %v1624_v35  ;;  %v761_v35 = vld [vmem:[%s2576_s16 + $0x38] sm:$0xff] }
 0x2fe   :  { %1626 = vmatprep.subr.bf16.mxu1 %v1830_v3  ;;  %v1669_v36 = vpack.c.bf16 %v761_v35, %v760_v34 }
 0x2ff   :  { %1649 = vmatpush3.bf16.msra.mxu0 %v1648_v59  ;;  %v1684_v59 = vpack.c.bf16 %v855_v58, %v854_v57 }
 0x300   :  { %1650 = vmatprep.subr.bf16.mxu0 %v1830_v3 }
 0x301   :  { %1628 = vmatpush3.bf16.msra.mxu1 %v1627_v38  ;;  %v763_v38 = vld [vmem:[%s2576_s16 + $0x48] sm:$0xff] }
 0x302   :  { %1629 = vmatprep.subr.bf16.mxu1 %v1830_v3  ;;  %v1672_v39 = vpack.c.bf16 %v763_v38, %v762_v37 }
 0x303   :  { %1652 = vmatpush3.bf16.msra.mxu0 %v1651_v62  ;;  %v1687_v62 = vpack.c.bf16 %v857_v61, %v856_v60 }
 0x304   :  { %1653 = vmatprep.subr.bf16.mxu0 %v1830_v3 }
 0x305   :  { %1631 = vmatpush3.bf16.msra.mxu1 %v1630_v41  ;;  %v765_v41 = vld [vmem:[%s2576_s16 + $0x58] sm:$0xff] }
 0x306   :  { %1632 = vmatprep.subr.bf16.mxu1 %v1830_v3  ;;  %v1675_v42 = vpack.c.bf16 %v765_v41, %v764_v40 }
 0x307   :  { %1655 = vmatpush3.bf16.msra.mxu0 %v1654_v1  ;;  %v1690_v1 = vpack.c.bf16 %v859_v0, %v858_v63 }
 0x308   :  { %1656 = vmatprep.subr.bf16.mxu0 %v1830_v3 }
 0x309   :  { %1634 = vmatpush3.bf16.msra.mxu1 %v1633_v44  ;;  %v767_v44 = vld [vmem:[%s2576_s16 + $0x68] sm:$0xff] }
 0x30a   :  { %1659 = vmatprep.subr.bf16.mxu1 %v1830_v3  ;;  %v1678_v45 = vpack.c.bf16 %v767_v44, %v766_v43 }
 0x30b   :  { %1658 = vmatpush3.bf16.msra.mxu0 %v1657_v20 }
 0x30c   :  { %1683 = vmatprep.subr.bf16.mxu0 %v1830_v3 }
 0x3bf   :  { %v455_v5 = vpop.f32.mrb[2].mxu1  ;;  %v548_v7 = vpop.f32.mrb[4].mxu0 }
 0x3c0   :  { %v456_v8 = vadd.f32 %v1014_v2, %v455_v5  ;;  %v549_v9 = vadd.f32 %v1015_v4, %v548_v7  ;;  %v1315_v10 = vpop.f32.mrb[3].mxu1  ;;  %v1350_v11 = vpop.f32.mrb[5].mxu0  ;;  %v860_v2 = vld [vmem:[%s2578_s18 + $0x30] sm:$0xff]  ;;  %v861_v4 = vld [vmem:[%s2578_s18 + $0x38] sm:$0xff]  ;;  %v862_v7 = vld [vmem:[%s2578_s18 + $0x40] sm:$0xff] }
 0x3c1   :  { %v1693_v5 = vpack.c.bf16 %v861_v4, %v860_v2  ;;  %v864_v10 = vld [vmem:[%s2578_s18 + $0x50] sm:$0xff]  ;;  %v865_v11 = vld [vmem:[%s2578_s18 + $0x58] sm:$0xff] }
 0x3c2   :  { %552 = vst [vmem:[#allocation6] sm:$0xff] %v456_v8  ;;  %v555_v12 = vmul.f32 0.5, %v549_v9  ;;  %553 = vst [vmem:[#allocation7] sm:$0xff] %v549_v9 }
 0x3c4   :  { %v556_v13 = vmul.f32 1.442695, %v555_v12  ;;  %v1699_v12 = vpack.c.bf16 %v865_v11, %v864_v10 }
 0x3c6   :  { %1722 = vpow2.f32 %v556_v13  ;;  %v866_v13 = vld [vmem:[%s2578_s18 + $0x60] sm:$0xff] }
 0x3d0   :  { %v1723_v15 = vpop.eup %1722 }
 0x3d1   :  { %v558_v16 = vmul.f32 %v1723_v15, %v554_v14  ;;  %v867_v14 = vld [vmem:[%s2578_s18 + $0x68] sm:$0xff] }
 0x3d2   :  { %v1702_v15 = vpack.c.bf16 %v867_v14, %v866_v13 }
 0x3d3   :  { %v559_v17 = vadd.f32 %v558_v16, %v456_v8  ;;  %v863_v8 = vld [vmem:[%s2578_s18 + $0x48] sm:$0xff]  ;;  %v868_v16 = vld [vmem:[%s2578_s18 + $0x70] sm:$0xff] }
 0x3d4   :  { %v1696_v9 = vpack.c.bf16 %v863_v8, %v862_v7 }
 0x3d5   :  { %1384 = vmatmul.mubr.f32.vlgmr.msra.gmra.mrb[4].mxu1 %v559_v17  ;;  %560 = vst [vmem:[#allocation4] sm:$0xff] %v559_v17  ;;  %v869_v17 = vld [vmem:[%s2578_s18 + $0x78] sm:$0xff]  ;;  %s1736_s18 = scalar_lea.vmem %s971_s10, 128 }
 0x3d6   :  { %1453 = vmatprep.mubr.msk.f32.mxu1 %vm1831_vm0, %v1832_v6  ;;  %1661 = vmatpush3.bf16.msra.mxu1 %v1660_v23  ;;  %v1705_v18 = vpack.c.bf16 %v869_v17, %v868_v16  ;;  %p1737_p0 = scmp.ne.s32.totalorder %s971_s10, %s1736_s18  ;;  %p1742_p2 = scmp.lt.s32.totalorder %s1736_s18, %s1736_s18 }
 0x3d7   :  { %1662 = vmatprep.subr.bf16.mxu1 %v1830_v3 }
 0x3d8   :  { %p1743_p3 = por %p1742_p2, %p1741_p1 }
 0x3da   :  { %1664 = vmatpush3.bf16.msra.mxu1 %v1663_v31  ;;  %p1744_p4 = pnand %p1743_p3, %p1737_p0 }
 0x3db   :  { %1665 = vmatprep.subr.bf16.mxu1 %v1830_v3 }
 0x4a8   :  { %v650_v25 = vpop.f32.mrb[4].mxu1 }
 0x4a9   :  { %v651_v26 = vadd.f32 %v1016_v24, %v650_v25  ;;  %v1385_v27 = vpop.f32.mrb[5].mxu1 }
 0x4ab   :  { %v654_v28 = vmax.f32 %v651_v26, 0.0 }
 0x4ad   :  { %1419 = vmatmul.mubr.f32.vlgmr.msra.gmra.mrb[6].mxu0 %v654_v28 }
 0x4ae   :  { %1488 = vmatprep.mubr.msk.f32.mxu0 %vm1831_vm0, %v1832_v6  ;;  %v759_v6 = vld [vmem:[%s2576_s16 + $0x28] sm:$0xff]  ;;  %1685 = vmatpush3.bf16.msra.mxu0 %v1684_v59 }
 0x4af   :  { %v1666_v33 = vpack.c.bf16 %v759_v6, %v758_v32  ;;  %1686 = vmatprep.subr.bf16.mxu0 %v1830_v3 }
 0x4b1   :  { %1667 = vmatpush3.bf16.msra.mxu1 %v1666_v33 }
 0x4b2   :  { %1668 = vmatprep.subr.bf16.mxu1 %v1830_v3  ;;  %1688 = vmatpush3.bf16.msra.mxu0 %v1687_v62 }
 0x4b3   :  { %1689 = vmatprep.subr.bf16.mxu0 %v1830_v3 }
 0x4b5   :  { %1670 = vmatpush3.bf16.msra.mxu1 %v1669_v36 }
 0x4b6   :  { %1671 = vmatprep.subr.bf16.mxu1 %v1830_v3  ;;  %1691 = vmatpush3.bf16.msra.mxu0 %v1690_v1 }
 0x4b7   :  { %1692 = vmatprep.subr.bf16.mxu0 %v1830_v3 }
 0x4b9   :  { %1673 = vmatpush3.bf16.msra.mxu1 %v1672_v39 }
 0x4ba   :  { %1674 = vmatprep.subr.bf16.mxu1 %v1830_v3  ;;  %1694 = vmatpush3.bf16.msra.mxu0 %v1693_v5 }
 0x4bb   :  { %1695 = vmatprep.subr.bf16.mxu0 %v1830_v3 }
 0x4bd   :  { %1676 = vmatpush3.bf16.msra.mxu1 %v1675_v42 }
 0x4be   :  { %1677 = vmatprep.subr.bf16.mxu1 %v1830_v3  ;;  %1697 = vmatpush3.bf16.msra.mxu0 %v1696_v9 }
 0x4bf   :  { %1698 = vmatprep.subr.bf16.mxu0 %v1830_v3 }
 0x4c1   :  { %1679 = vmatpush3.bf16.msra.mxu1 %v1678_v45 }
 0x4c2   :  { %1680 = vmatprep.subr.bf16.mxu1 %v1830_v3  ;;  %1700 = vmatpush3.bf16.msra.mxu0 %v1699_v12 }
 0x4c3   :  { %1701 = vmatprep.subr.bf16.mxu0 %v1830_v3 }
 0x4c5   :  { %1682 = vmatpush3.bf16.msra.mxu1 %v1681_v48 }
 0x4c6   :  { %1703 = vmatpush3.bf16.msra.mxu0 %v1702_v15 }
 0x4c7   :  { %1704 = vmatprep.subr.bf16.mxu0 %v1830_v3 }
 0x4ca   :  { %1706 = vmatpush3.bf16.msra.mxu0 %v1705_v18 }
 0x580   :  { %v744_v50 = vpop.f32.mrb[6].mxu0 }
 0x581   :  { %v745_v51 = vadd.f32 %v1017_v49, %v744_v50  ;;  %v1420_v52 = vpop.f32.mrb[7].mxu0 }
 0x583   :  { %v1018_v53 = vmul.f32 -1.442695, %v745_v51 }
 0x585   :  { %1724 = vpow2.f32 %v1018_v53 }
 0x58f   :  { %v1725_v54 = vpop.eup %1724 }
 0x590   :  { %v751_v55 = vadd.f32 1.0, %v1725_v54 }
 0x592   :  { %1726 = vrcp.f32 %v751_v55 }
 0x59c   :  { %v1727_v56 = vpop.eup %1726 }
 0x59d   :  { %1454 = vmatmul.mubr.f32.vlgmr.msra.gmra.mrb[6].mxu1 %v1727_v56 }
 0x670   :  { %v843_v20 = vpop.f32.mrb[6].mxu1 }
 0x671   :  { %v844_v21 = vadd.f32 %v1019_v19, %v843_v20  ;;  %v1455_v22 = vpop.f32.mrb[7].mxu1 }
 0x673   :  { %v1020_v23 = vmul.f32 -1.442695, %v844_v21 }
 0x675   :  { %1728 = vpow2.f32 %v1020_v23 }
 0x67f   :  { %v1729_v3 = vpop.eup %1728 }
 0x680   :  { %v850_v24 = vadd.f32 1.0, %v1729_v3 }
 0x682   :  { %1730 = vrcp.f32 %v850_v24 }
 0x68c   :  { %v1731_v25 = vpop.eup %1730 }
 0x68d   :  { %v853_v26 = vmul.f32 %v1731_v25, %v844_v21 }
 0x68f   :  { %1489 = vmatmul.mubr.f32.vlgmr.msra.gmra.mrb[8].mxu0 %v853_v26 }
 0x690   :  { %1747 = shalt.err (!%p1744_p4)
}
 0x691   :  { %s1748_s1 = scalar_lea.hbm %s2581_s21, 128 }
 0x692   :  { %p1749_p5 = scmp.ne.s32.totalorder %s2581_s21, %s1748_s1  ;;  %p1752_p6 = scmp.lt.u32.totalorder %s1748_s1, %s2581_s21 }
 0x694   :  { %p1754_p7 = pnand %p1752_p6, %p1749_p5 }
 0x696   :  { %1757 = shalt.err (!%p1754_p7)
}
 0x697   :  { %973 = dma.vmem_to_hbm [thread:$0]  %s971_s10, 128, %s2581_s21, [#allocation5]  }
 0x698   :  { %s1834_s13 = smov [#allocation6]  }
 0x699   :  { %s980_s4 = sshll.u32 %s1834_s13, 4  ;;  %s981_s4 = int_to_ptr.vmem [resolvable:$true] %s980_s4 }
 0x69a   :  { %s1758_s27 = scalar_lea.vmem %s981_s4, 128  ;;  %p1763_p9 = scmp.lt.s32.totalorder %s981_s4, %s981_s4 }
 0x69b   :  { %p1759_p8 = scmp.ne.s32.totalorder %s981_s4, %s1758_s27  ;;  %p1764_p10 = scmp.lt.s32.totalorder %s1758_s27, %s1758_s27 }
 0x69d   :  { %p1765_p11 = por %p1764_p10, %p1763_p9 }
 0x69f   :  { %p1766_p12 = pnand %p1765_p11, %p1759_p8 }
 0x6a1   :  { %1769 = shalt.err (!%p1766_p12)
}
 0x6a2   :  { %s1770_s5 = scalar_lea.hbm %s2582_s22, 128 }
 0x6a3   :  { %p1771_p13 = scmp.ne.s32.totalorder %s2582_s22, %s1770_s5  ;;  %p1774_p0 = scmp.lt.u32.totalorder %s1770_s5, %s2582_s22 }
 0x6a5   :  { %p1776_p1 = pnand %p1774_p0, %p1771_p13 }
 0x6a7   :  { %1779 = shalt.err (!%p1776_p1)
}
 0x6a8   :  { %983 = dma.vmem_to_hbm [thread:$0]  %s981_s4, 128, %s2582_s22, [#allocation5]  }
 0x6a9   :  { %s1835_s11 = smov [#allocation7]  }
 0x6aa   :  { %s990_s0 = sshll.u32 %s1835_s11, 4  ;;  %s991_s0 = int_to_ptr.vmem [resolvable:$true] %s990_s0 }
 0x6ab   :  { %s1780_s8 = scalar_lea.vmem %s991_s0, 128  ;;  %p1785_p3 = scmp.lt.s32.totalorder %s991_s0, %s991_s0 }
 0x6ac   :  { %p1781_p2 = scmp.ne.s32.totalorder %s991_s0, %s1780_s8  ;;  %p1786_p4 = scmp.lt.s32.totalorder %s1780_s8, %s1780_s8 }
 0x6ae   :  { %p1787_p5 = por %p1786_p4, %p1785_p3 }
 0x6b0   :  { %p1788_p6 = pnand %p1787_p5, %p1781_p2 }
 0x6b2   :  { %1791 = shalt.err (!%p1788_p6)
}
 0x6b3   :  { %s1792_s18 = scalar_lea.hbm %s2583_s23, 128 }
 0x6b4   :  { %p1793_p7 = scmp.ne.s32.totalorder %s2583_s23, %s1792_s18  ;;  %p1796_p8 = scmp.lt.u32.totalorder %s1792_s18, %s2583_s23 }
 0x6b6   :  { %p1798_p9 = pnand %p1796_p8, %p1793_p7 }
 0x6b8   :  { %1801 = shalt.err (!%p1798_p9)
}
 0x6b9   :  { %993 = dma.vmem_to_hbm [thread:$0]  %s991_s0, 128, %s2583_s23, [#allocation8]   ;;  %v1021_v27 = vld [vmem:[%s2579_s19] ss:$0 sm:$0xff] }
 0x6ba   :  { %s1836_s6 = smov [#allocation2]  }
 0x6bb   :  { %s960_s24 = sshll.u32 %s1836_s6, 4  ;;  %s961_s24 = int_to_ptr.vmem [resolvable:$true] %s960_s24 }
 0x6bc   :  { %s1802_s13 = scalar_lea.vmem %s961_s24, 128  ;;  %p1807_p11 = scmp.lt.s32.totalorder %s961_s24, %s961_s24 }
 0x6bd   :  { %p1803_p10 = scmp.ne.s32.totalorder %s961_s24, %s1802_s13  ;;  %p1808_p12 = scmp.lt.s32.totalorder %s1802_s13, %s1802_s13 }
 0x6bf   :  { %p1809_p13 = por %p1808_p12, %p1807_p11 }
 0x6c1   :  { %p1810_p0 = pnand %p1809_p13, %p1803_p10 }
 0x762   :  { %v943_v28 = vpop.f32.mrb[8].mxu0 }
 0x763   :  { %v944_v29 = vadd.f32 %v1021_v27, %v943_v28  ;;  %v1490_v30 = vpop.f32.mrb[9].mxu0 }
 0x765   :  { %v1022_v31 = vmul.f32 -1.442695, %v944_v29 }
 0x767   :  { %1732 = vpow2.f32 %v1022_v31 }
 0x771   :  { %v1733_v32 = vpop.eup %1732 }
 0x772   :  { %v950_v6 = vadd.f32 1.0, %v1733_v32 }
 0x774   :  { %1734 = vrcp.f32 %v950_v6 }
 0x77e   :  { %v1735_v33 = vpop.eup %1734 }
 0x77f   :  { %953 = vst [vmem:[#allocation2] sm:$0xff] %v1735_v33 }
 0x780   :  { %1813 = shalt.err (!%p1810_p0)
}
 0x781   :  { %s1814_s4 = scalar_lea.hbm %s2580_s20, 128 }
 0x782   :  { %p1815_p1 = scmp.ne.s32.totalorder %s2580_s20, %s1814_s4  ;;  %p1818_p2 = scmp.lt.u32.totalorder %s1814_s4, %s2580_s20 }
 0x784   :  { %p1820_p3 = pnand %p1818_p2, %p1815_p1 }
 0x786   :  { %1823 = shalt.err (!%p1820_p3)
}
 0x787   :  { %963 = dma.vmem_to_hbm [thread:$0]  %s961_s24, 128, %s2580_s20, [#allocation3]  }
 0x788   :  { %1824 = dma.done.wait [#allocation3], 128  }
 0x789   :  { %1825 = vsyncadd [#allocation3], 4294967168 }
 0x78a   :  { %1826 = dma.done.wait [#allocation5], 256  }
 0x78b   :  { %1827 = vsyncadd [#allocation5], 4294967040 }
 0x78c   :  { %1828 = dma.done.wait [#allocation8], 128  }
 0x78d   :  { %1829 = vsyncadd [#allocation8], 4294967168 }
 0x78e   :  { %1006 = vsyncpa [#allocation3], 1 }
 0x78f   :  { %1007 = vsyncpa [#allocation5], 1 }
 0x790   :  { %1008 = vsyncpa [#allocation8], 1 }

</bundles_post_ra>
